<compile_context>
chip_gen: v5e
topology: v5e:2x2
jax: 0.10.0
libtpu: 0.0.40
codegen_flags: <defaults>
</compile_context>

<pallas_src>
import functools
import math

import jax
import jax.numpy as jnp
from jax.experimental import pallas as pl
from jax.experimental.pallas import tpu as pltpu


COMPUTE_DTYPE = jnp.bfloat16          # MXU-native activations / weights
VMEM_LIMIT = 32 * 1024 * 1024         # explicit scoped-VMEM budget (fits v7x's 64 MiB)


# ------------------------------ tiling helpers ------------------------------

def _pick_tile(dim, pref):
    """Largest MXU-friendly tile that evenly divides `dim`; else full dim."""
    if dim <= pref:
        return dim
    for t in (pref, 512, 256, 128):
        if t <= pref and dim % t == 0:
            return t
    return dim


def _activate(y, activation):
    if activation == "relu":
        return jnp.maximum(y, 0.0)
    if activation == "gelu":
        # TODO(synk): PyTorch nn.GELU default is exact erf GELU; tanh approximation used here.
        return jax.nn.gelu(y, approximate=True)
    if activation == "sigmoid":
        return jax.nn.sigmoid(y)
    return y


# ----------------------------- Pallas kernels -------------------------------

def _make_matmul_kernel(activation, has_residual):
    """Tiled matmul with f32 accumulator; optional fused residual add."""
    def kernel(*refs):
        if has_residual:
            x_ref, w_ref, b_ref, r_ref, o_ref, acc_ref = refs
        else:
            x_ref, w_ref, b_ref, o_ref, acc_ref = refs
            r_ref = None
        k_idx = pl.program_id(2)

        @pl.when(k_idx == 0)
        def _():
            acc_ref[...] = jnp.zeros_like(acc_ref)

        acc_ref[...] += jnp.dot(x_ref[...], w_ref[...],
                                preferred_element_type=jnp.float32)

        @pl.when(k_idx == pl.num_programs(2) - 1)
        def _():
            y = acc_ref[...] + b_ref[...].astype(jnp.float32)
            y = _activate(y, activation)
            if r_ref is not None:
                y = y + r_ref[...].astype(jnp.float32)   # residual add in f32
            o_ref[...] = y.astype(o_ref.dtype)
    return kernel


def pallas_linear(x2d, w, b, activation="none", residual=None,
                  tm=256, tn=256, tk=512):
    M, K = x2d.shape
    N = w.shape[1]
    tm = _pick_tile(M, tm)
    tn = _pick_tile(N, tn)
    tk = _pick_tile(K, tk)
    grid = (M // tm, N // tn, K // tk)
    in_specs = [
        pl.BlockSpec((tm, tk), lambda i, j, k: (i, k)),
        pl.BlockSpec((tk, tn), lambda i, j, k: (k, j)),
        pl.BlockSpec((1, tn), lambda i, j, k: (0, j)),
    ]
    args = [x2d, w, b.reshape(1, N)]
    if residual is not None:
        in_specs.append(pl.BlockSpec((tm, tn), lambda i, j, k: (i, j)))
        args.append(residual)
    return pl.pallas_call(
        _make_matmul_kernel(activation, residual is not None),
        out_shape=jax.ShapeDtypeStruct((M, N), x2d.dtype),
        grid=grid,
        in_specs=in_specs,
        out_specs=pl.BlockSpec((tm, tn), lambda i, j, k: (i, j)),
        scratch_shapes=[pltpu.VMEM((tm, tn), jnp.float32)],
        compiler_params=pltpu.CompilerParams(
            dimension_semantics=("parallel", "parallel", "arbitrary"),
            vmem_limit_bytes=VMEM_LIMIT),
    )(*args)


def _make_multi_linear_kernel(n_out):
    """Several projections of the same input in one kernel (K untiled)."""
    def kernel(*refs):
        x = refs[0][...]
        for idx in range(n_out):
            w_ref = refs[1 + 2 * idx]
            b_ref = refs[2 + 2 * idx]
            o_ref = refs[1 + 2 * n_out + idx]
            y = jnp.dot(x, w_ref[...], preferred_element_type=jnp.float32)
            y = y + b_ref[...].astype(jnp.float32)
            o_ref[...] = y.astype(o_ref.dtype)
    return kernel


def pallas_multi_linear(x2d, wbs, tm=256):
    M, K = x2d.shape
    tm = _pick_tile(M, tm)
    n_out = len(wbs)
    in_specs = [pl.BlockSpec((tm, K), lambda i: (i, 0))]
    args = [x2d]
    out_shapes, out_specs = [], []
    for w, b in wbs:
        N = w.shape[1]
        in_specs += [pl.BlockSpec((K, N), lambda i: (0, 0)),
                     pl.BlockSpec((1, N), lambda i: (0, 0))]
        args += [w, b.reshape(1, N)]
        out_shapes.append(jax.ShapeDtypeStruct((M, N), x2d.dtype))
        out_specs.append(pl.BlockSpec((tm, N), lambda i: (i, 0)))
    return pl.pallas_call(
        _make_multi_linear_kernel(n_out),
        out_shape=tuple(out_shapes),
        grid=(M // tm,),
        in_specs=in_specs,
        out_specs=tuple(out_specs),
        compiler_params=pltpu.CompilerParams(
            dimension_semantics=("parallel",),
            vmem_limit_bytes=VMEM_LIMIT),
    )(*args)


def _make_ln_kernel(has_residual, eps):
    def kernel(*refs):
        if has_residual:
            x_ref, r_ref, g_ref, b_ref, o_ref = refs
        else:
            x_ref, g_ref, b_ref, o_ref = refs
            r_ref = None
        x = x_ref[...].astype(jnp.float32)
        if r_ref is not None:
            x = x + r_ref[...].astype(jnp.float32)
        mean = jnp.mean(x, axis=-1, keepdims=True)
        var = jnp.mean(jnp.square(x - mean), axis=-1, keepdims=True)
        y = (x - mean) * jax.lax.rsqrt(var + eps)
        y = y * g_ref[...].astype(jnp.float32) + b_ref[...].astype(jnp.float32)
        o_ref[...] = y.astype(o_ref.dtype)
    return kernel


def pallas_layernorm(x2d, gamma, beta, residual=None, eps=1e-5, tm=256):
    M, D = x2d.shape
    tm = _pick_tile(M, tm)
    in_specs = [pl.BlockSpec((tm, D), lambda i: (i, 0))]
    args = [x2d]
    if residual is not None:
        in_specs.append(pl.BlockSpec((tm, D), lambda i: (i, 0)))
        args.append(residual)
    in_specs += [pl.BlockSpec((1, D), lambda i: (0, 0)),
                 pl.BlockSpec((1, D), lambda i: (0, 0))]
    args += [gamma.reshape(1, D), beta.reshape(1, D)]
    return pl.pallas_call(
        _make_ln_kernel(residual is not None, eps),
        out_shape=jax.ShapeDtypeStruct((M, D), x2d.dtype),
        grid=(M // tm,),
        in_specs=in_specs,
        out_specs=pl.BlockSpec((tm, D), lambda i: (i, 0)),
        compiler_params=pltpu.CompilerParams(
            dimension_semantics=("parallel",),
            vmem_limit_bytes=VMEM_LIMIT),
    )(*args)


def _make_ln_matmul_kernel(activation, eps):
    """Fused pre-LayerNorm + linear (K = full feature dim)."""
    def kernel(x_ref, g_ref, bt_ref, w_ref, b_ref, o_ref):
        x = x_ref[...].astype(jnp.float32)
        mean = jnp.mean(x, axis=-1, keepdims=True)
        var = jnp.mean(jnp.square(x - mean), axis=-1, keepdims=True)
        h = (x - mean) * jax.lax.rsqrt(var + eps)
        h = h * g_ref[...].astype(jnp.float32) + bt_ref[...].astype(jnp.float32)
        y = jnp.dot(h.astype(o_ref.dtype), w_ref[...],
                    preferred_element_type=jnp.float32)
        y = y + b_ref[...].astype(jnp.float32)
        o_ref[...] = _activate(y, activation).astype(o_ref.dtype)
    return kernel


def pallas_ln_linear(x2d, gamma, beta, w, b, activation="none",
                     tm=256, tn=512, eps=1e-5):
    M, K = x2d.shape
    N = w.shape[1]
    tm = _pick_tile(M, tm)
    tn = _pick_tile(N, tn)
    return pl.pallas_call(
        _make_ln_matmul_kernel(activation, eps),
        out_shape=jax.ShapeDtypeStruct((M, N), x2d.dtype),
        grid=(M // tm, N // tn),
        in_specs=[
            pl.BlockSpec((tm, K), lambda i, j: (i, 0)),
            pl.BlockSpec((1, K), lambda i, j: (0, 0)),
            pl.BlockSpec((1, K), lambda i, j: (0, 0)),
            pl.BlockSpec((K, tn), lambda i, j: (0, j)),
            pl.BlockSpec((1, tn), lambda i, j: (0, j)),
        ],
        out_specs=pl.BlockSpec((tm, tn), lambda i, j: (i, j)),
        compiler_params=pltpu.CompilerParams(
            dimension_semantics=("parallel", "parallel"),
            vmem_limit_bytes=VMEM_LIMIT),
    )(x2d, gamma.reshape(1, K), beta.reshape(1, K), w, b.reshape(1, N))


def _ln_qkv_lora_kernel(x_ref, g_ref, bt_ref, wq_ref, bq_ref, wk_ref, bk_ref,
                        wv_ref, bv_ref, la_ref, lb_ref, q_ref, k_ref, v_ref,
                        *, eps, lora_scale):
    """Encoder pre-LN + fused Q/K/V projections; LoRA applied as two skinny matmuls."""
    x = x_ref[...].astype(jnp.float32)
    mean = jnp.mean(x, axis=-1, keepdims=True)
    var = jnp.mean(jnp.square(x - mean), axis=-1, keepdims=True)
    h = (x - mean) * jax.lax.rsqrt(var + eps)
    h = h * g_ref[...].astype(jnp.float32) + bt_ref[...].astype(jnp.float32)
    hb = h.astype(q_ref.dtype)                                    # bf16 for MXU

    q = jnp.dot(hb, wq_ref[...], preferred_element_type=jnp.float32)
    q = q + bq_ref[...].astype(jnp.float32)
    lora_mid = jnp.dot(hb, la_ref[...], preferred_element_type=jnp.float32)
    lora = jnp.dot(lora_mid.astype(q_ref.dtype), lb_ref[...],
                   preferred_element_type=jnp.float32)
    q = q + lora_scale * lora

    k = jnp.dot(hb, wk_ref[...], preferred_element_type=jnp.float32)
    k = k + bk_ref[...].astype(jnp.float32)
    v = jnp.dot(hb, wv_ref[...], preferred_element_type=jnp.float32)
    v = v + bv_ref[...].astype(jnp.float32)

    q_ref[...] = q.astype(q_ref.dtype)
    k_ref[...] = k.astype(k_ref.dtype)
    v_ref[...] = v.astype(v_ref.dtype)


def pallas_ln_qkv_lora(x2d, ln_g, ln_b, attn, lora_a, lora_b, lora_scale,
                       eps=1e-5, tm=256):
    M, D = x2d.shape
    r = lora_a.shape[1]
    tm = _pick_tile(M, tm)
    full = lambda i: (0, 0)
    row = lambda i: (i, 0)
    in_specs = [
        pl.BlockSpec((tm, D), row),
        pl.BlockSpec((1, D), full), pl.BlockSpec((1, D), full),
        pl.BlockSpec((D, D), full), pl.BlockSpec((1, D), full),
        pl.BlockSpec((D, D), full), pl.BlockSpec((1, D), full),
        pl.BlockSpec((D, D), full), pl.BlockSpec((1, D), full),
        pl.BlockSpec((D, r), full), pl.BlockSpec((r, D), full),
    ]
    args = [x2d, ln_g.reshape(1, D), ln_b.reshape(1, D),
            attn["wq"], attn["bq"].reshape(1, D),
            attn["wk"], attn["bk"].reshape(1, D),
            attn["wv"], attn["bv"].reshape(1, D),
            lora_a, lora_b]
    out_shape = tuple(jax.ShapeDtypeStruct((M, D), x2d.dtype) for _ in range(3))
    out_specs = tuple(pl.BlockSpec((tm, D), row) for _ in range(3))
    return pl.pallas_call(
        functools.partial(_ln_qkv_lora_kernel, eps=eps, lora_scale=lora_scale),
        out_shape=out_shape,
        grid=(M // tm,),
        in_specs=in_specs,
        out_specs=out_specs,
        compiler_params=pltpu.CompilerParams(
            dimension_semantics=("parallel",),
            vmem_limit_bytes=VMEM_LIMIT),
    )(*args)


def _attention_kernel(q_ref, k_ref, v_ref, o_ref, *, scale):
    q = q_ref[...][0].astype(jnp.float32)    # (H, tq, Dh)
    k = k_ref[...][0].astype(jnp.float32)    # (H, Lk, Dh)
    v = v_ref[...][0].astype(jnp.float32)    # (H, Lk, Dh)
    s = jnp.einsum("hqd,hkd->hqk", q, k,
                   preferred_element_type=jnp.float32) * scale
    s = s - jnp.max(s, axis=-1, keepdims=True)
    p = jnp.exp(s)
    inv = pl.reciprocal(jnp.sum(p, axis=-1, keepdims=True), approx=True)
    o = jnp.einsum("hqk,hkd->hqd", p, v,
                   preferred_element_type=jnp.float32) * inv
    # TODO(synk): for long sequences switch to a flash-style online-softmax
    # kernel (grid over kv tiles with m/l/acc scratch) instead of full-Lk scores.
    o_ref[...] = o[None].astype(o_ref.dtype)


def pallas_attention(q, k, v, scale, tq=128):
    # q, k, v: (B, H, L, Dh) — all heads of one batch in one block.
    B, H, Lq, Dh = q.shape
    Lk = k.shape[2]
    tq = _pick_tile(Lq, tq)
    return pl.pallas_call(
        functools.partial(_attention_kernel, scale=scale),
        out_shape=jax.ShapeDtypeStruct((B, H, Lq, Dh), q.dtype),
        grid=(B, Lq // tq),
        in_specs=[
            pl.BlockSpec((1, H, tq, Dh), lambda b, i: (b, 0, i, 0)),
            pl.BlockSpec((1, H, Lk, Dh), lambda b, i: (b, 0, 0, 0)),
            pl.BlockSpec((1, H, Lk, Dh), lambda b, i: (b, 0, 0, 0)),
        ],
        out_specs=pl.BlockSpec((1, H, tq, Dh), lambda b, i: (b, 0, i, 0)),
        compiler_params=pltpu.CompilerParams(
            dimension_semantics=("parallel", "parallel"),
            vmem_limit_bytes=VMEM_LIMIT),
    )(q, k, v)


def _det_head_kernel(x_ref, wc_ref, bc_ref, w1_ref, b1_ref, w2_ref, b2_ref,
                     w3_ref, b3_ref, logit_ref, box_ref):
    """Fused class head + 3-layer bbox MLP + sigmoid."""
    x = x_ref[...]
    logits = jnp.dot(x, wc_ref[...], preferred_element_type=jnp.float32)
    logits = logits + bc_ref[...].astype(jnp.float32)

    h = jnp.dot(x, w1_ref[...], preferred_element_type=jnp.float32)
    h = jnp.maximum(h + b1_ref[...].astype(jnp.float32), 0.0).astype(x.dtype)
    h = jnp.dot(h, w2_ref[...], preferred_element_type=jnp.float32)
    h = jnp.maximum(h + b2_ref[...].astype(jnp.float32), 0.0).astype(x.dtype)
    boxes = jnp.dot(h, w3_ref[...], preferred_element_type=jnp.float32)
    boxes = jax.nn.sigmoid(boxes + b3_ref[...].astype(jnp.float32))

    logit_ref[...] = logits.astype(logit_ref.dtype)
    box_ref[...] = boxes.astype(box_ref.dtype)


def pallas_det_heads(x2d, class_p, bbox1, bbox2, bbox3, tm=256):
    M, D = x2d.shape
    C1 = class_p["w"].shape[1]
    tm = _pick_tile(M, tm)
    full = lambda i: (0, 0)
    row = lambda i: (i, 0)
    in_specs = [pl.BlockSpec((tm, D), row)]
    args = [x2d]
    for p in (class_p, bbox1, bbox2, bbox3):
        N = p["w"].shape[1]
        in_specs += [pl.BlockSpec((D, N), full), pl.BlockSpec((1, N), full)]
        args += [p["w"], p["b"].reshape(1, N)]
    return pl.pallas_call(
        _det_head_kernel,
        out_shape=(jax.ShapeDtypeStruct((M, C1), jnp.float32),
                   jax.ShapeDtypeStruct((M, 4), jnp.float32)),
        grid=(M // tm,),
        in_specs=in_specs,
        out_specs=(pl.BlockSpec((tm, C1), row), pl.BlockSpec((tm, 4), row)),
        compiler_params=pltpu.CompilerParams(
            dimension_semantics=("parallel",),
            vmem_limit_bytes=VMEM_LIMIT),
    )(*args)


# --------------------------- model building blocks --------------------------

def run_attention_heads(q, k, v, B, Lq, Lk, nheads):
    D = q.shape[-1]
    Dh = D // nheads

    def split(t, L):
        return t.reshape(B, L, nheads, Dh).transpose(0, 2, 1, 3)

    o = pallas_attention(split(q, Lq), split(k, Lk), split(v, Lk),
                         1.0 / math.sqrt(Dh))
    # TODO(synk): fold head split/merge transposes into the projection kernels'
    # output layouts (out_specs) to avoid the extra XLA relayout passes.
    return o.transpose(0, 2, 1, 3).reshape(B * Lq, D)


def multi_head_attention(x_q, x_kv, p, nheads):
    B, Lq, D = x_q.shape
    Lk = x_kv.shape[1]
    xq2 = x_q.reshape(B * Lq, D)
    xkv2 = x_kv.reshape(B * Lk, D)
    if x_q is x_kv:  # self-attention: fuse q/k/v projections in one kernel
        q, k, v = pallas_multi_linear(
            xq2, [(p["wq"], p["bq"]), (p["wk"], p["bk"]), (p["wv"], p["bv"])])
    else:            # cross-attention: q alone, k/v fused
        q = pallas_linear(xq2, p["wq"], p["bq"])
        k, v = pallas_multi_linear(xkv2, [(p["wk"], p["bk"]), (p["wv"], p["bv"])])
    o = run_attention_heads(q, k, v, B, Lq, Lk, nheads)
    return pallas_linear(o, p["wo"], p["bo"])   # (B*Lq, D)


class KeyGen:
    def __init__(self, seed=0):
        self.key = jax.random.PRNGKey(seed)

    def __call__(self):
        self.key, sub = jax.random.split(self.key)
        return sub


def init_linear(kg, fan_in, fan_out, scale=0.02):
    return {
        "w": (jax.random.normal(kg(), (fan_in, fan_out), jnp.float32) * scale
              ).astype(COMPUTE_DTYPE),
        "b": jnp.zeros((fan_out,), jnp.float32),
    }


def init_mha(kg, d):
    p = {}
    for n in ("q", "k", "v", "o"):
        lin = init_linear(kg, d, d)
        p["w" + n] = lin["w"]
        p["b" + n] = lin["b"]
    return p


def init_params(kg, cfg):
    D = cfg["hidden_dim"]
    ff = cfg["dim_feedforward"]
    p_sz = cfg["patch_size"]
    r = cfg["lora_r"]
    params = {
        "patch_embed": init_linear(kg, 3 * p_sz * p_sz, D),
        "pos_embed": (jax.random.normal(kg(), (cfg["num_patches"], D), jnp.float32)
                      * 0.02).astype(COMPUTE_DTYPE),
        "encoder": [],
        "proj": init_linear(kg, D, D),
        "query_embed": (jax.random.normal(kg(), (cfg["num_queries"], D), jnp.float32)
                        * 0.02).astype(COMPUTE_DTYPE),
        "dec_layers": [],
        "class_embed": init_linear(kg, D, cfg["num_classes"] + 1),
        "bbox1": init_linear(kg, D, D),
        "bbox2": init_linear(kg, D, D),
        "bbox3": init_linear(kg, D, 4),
    }
    for _ in range(cfg["num_encoder_layers"]):
        params["encoder"].append({
            "ln1_g": jnp.ones((D,), jnp.float32), "ln1_b": jnp.zeros((D,), jnp.float32),
            "attn": init_mha(kg, D),
            # standard LoRA init: A ~ N(0, s), B = 0
            "lora_a": (jax.random.normal(kg(), (D, r), jnp.float32) * 0.02
                       ).astype(COMPUTE_DTYPE),
            "lora_b": jnp.zeros((r, D), COMPUTE_DTYPE),
            "ln2_g": jnp.ones((D,), jnp.float32), "ln2_b": jnp.zeros((D,), jnp.float32),
            "fc1": init_linear(kg, D, ff),
            "fc2": init_linear(kg, ff, D),
        })
    for _ in range(cfg["num_decoder_layers"]):
        params["dec_layers"].append({
            "self_attn": init_mha(kg, D),
            "cross_attn": init_mha(kg, D),
            "lin1": init_linear(kg, D, ff),
            "lin2": init_linear(kg, ff, D),
            "norm1_g": jnp.ones((D,), jnp.float32), "norm1_b": jnp.zeros((D,), jnp.float32),
            "norm2_g": jnp.ones((D,), jnp.float32), "norm2_b": jnp.zeros((D,), jnp.float32),
            "norm3_g": jnp.ones((D,), jnp.float32), "norm3_b": jnp.zeros((D,), jnp.float32),
        })
    return params


# ------------------------------- forward pass --------------------------------

def backbone_forward(params, pixel_values, cfg):
    # pixel_values: NCHW [B, 3, H, W]
    B, C, H, W = pixel_values.shape
    p_sz = cfg["patch_size"]
    Hp, Wp = H // p_sz, W // p_sz
    N = Hp * Wp
    D = cfg["hidden_dim"]

    # patch embedding: conv(k=p, stride=p) == per-patch matmul
    patches = pixel_values.reshape(B, C, Hp, p_sz, Wp, p_sz)
    patches = patches.transpose(0, 2, 4, 1, 3, 5).reshape(B * N, C * p_sz * p_sz)
    patches = patches.astype(COMPUTE_DTYPE)
    x = pallas_linear(patches, params["patch_embed"]["w"], params["patch_embed"]["b"])
    x = (x.reshape(B, N, D) + params["pos_embed"][None]).reshape(B * N, D)

    lora_scale = cfg["lora_alpha"] / cfg["lora_r"]
    nheads = cfg["nheads"]
    for layer in params["encoder"]:
        # pre-LN self-attention; LN1 + Q/K/V + LoRA fused into one kernel
        q, k, v = pallas_ln_qkv_lora(x, layer["ln1_g"], layer["ln1_b"],
                                     layer["attn"], layer["lora_a"],
                                     layer["lora_b"], lora_scale)
        attn = run_attention_heads(q, k, v, B, N, N, nheads)
        # output projection with fused residual add: x = x + Wo(attn)
        x = pallas_linear(attn, layer["attn"]["wo"], layer["attn"]["bo"], residual=x)
        # pre-LN MLP: LN2 fused into fc1; fc2 fuses the residual add
        h = pallas_ln_linear(x, layer["ln2_g"], layer["ln2_b"],
                             layer["fc1"]["w"], layer["fc1"]["b"], activation="gelu")
        x = pallas_linear(h, layer["fc2"]["w"], layer["fc2"]["b"], residual=x)

    # projection to target_dim (== hidden_dim)
    x = pallas_linear(x, params["proj"]["w"], params["proj"]["b"])
    return x.reshape(B, N, D)


def decoder_forward(params, memory, cfg):
    B, N, D = memory.shape
    Q = cfg["num_queries"]
    nheads = cfg["nheads"]
    tgt = jnp.broadcast_to(params["query_embed"][None], (B, Q, D)).astype(COMPUTE_DTYPE)
    tgt2 = tgt.reshape(B * Q, D)

    for layer in params["dec_layers"]:
        # self-attention over queries (post-LN, dropout = identity in eval)
        sa = multi_head_attention(tgt, tgt, layer["self_attn"], nheads)
        tgt2 = pallas_layernorm(sa, layer["norm1_g"], layer["norm1_b"], residual=tgt2)
        tgt = tgt2.reshape(B, Q, D)
        # cross-attention to backbone features
        # TODO(synk): deformable attention (use_deformable) has no clean Pallas
        # equivalent here; standard dense cross-attention is used instead.
        ca = multi_head_attention(tgt, memory, layer["cross_attn"], nheads)
        tgt2 = pallas_layernorm(ca, layer["norm2_g"], layer["norm2_b"], residual=tgt2)
        # feed-forward (ReLU) + residual LayerNorm
        h = pallas_linear(tgt2, layer["lin1"]["w"], layer["lin1"]["b"], activation="relu")
        h = pallas_linear(h, layer["lin2"]["w"], layer["lin2"]["b"])
        tgt2 = pallas_layernorm(h, layer["norm3_g"], layer["norm3_b"], residual=tgt2)
        tgt = tgt2.reshape(B, Q, D)

    # fused class head + bbox MLP + sigmoid
    logits, boxes = pallas_det_heads(tgt2, params["class_embed"],
                                     params["bbox1"], params["bbox2"], params["bbox3"])
    return {
        "pred_logits": logits.reshape(B, Q, cfg["num_classes"] + 1),
        "pred_boxes": boxes.reshape(B, Q, 4),
    }


def detector_forward(params, pixel_values, cfg):
    features = backbone_forward(params, pixel_values, cfg)
    return decoder_forward(params, features, cfg)


# ---------------------------------- main -------------------------------------

if __name__ == "__main__":
    cfg = dict(
        num_classes=5,
        hidden_dim=32,
        num_queries=8,
        nheads=4,
        num_decoder_layers=2,
        num_encoder_layers=1,
        dim_feedforward=64,
        lora_r=4,
        lora_alpha=8,
        patch_size=8,
        num_patches=(32 // 8) * (32 // 8),
        dropout=0.0,
        use_deformable=False,
    )

    kg = KeyGen(seed=0)
    params = init_params(kg, cfg)

    pixel_values = jax.random.normal(jax.random.PRNGKey(0), (2, 3, 32, 32), jnp.float32)

    out = detector_forward(params, pixel_values, cfg)
    out = jax.block_until_ready(out)

    assert out["pred_logits"].shape == (2, cfg["num_queries"], cfg["num_classes"] + 1)
    assert out["pred_boxes"].shape == (2, cfg["num_queries"], 4)
    assert bool(jnp.all(jnp.isfinite(out["pred_logits"])))
    assert bool(jnp.all((out["pred_boxes"] >= 0) & (out["pred_boxes"] <= 1)))
    print("KERNEL_OK")
</pallas_src>

<mosaic_0001>
module attributes {stable_mosaic.version = 11 : i64} {
  func.func @kernel(%arg0: i32, %arg1: i32, %arg2: i32, %arg3: memref<32x192xbf16, #tpu.memory_space<vmem>>, %arg4: memref<192x32xbf16, #tpu.memory_space<vmem>>, %arg5: memref<1x32xf32, #tpu.memory_space<vmem>>, %arg6: memref<32x32xbf16, #tpu.memory_space<vmem>>, %arg7: memref<32x32xf32, #tpu.memory_space<vmem>>) attributes {dimension_semantics = [#tpu.dimension_semantics<parallel>, #tpu.dimension_semantics<parallel>, #tpu.dimension_semantics<arbitrary>], iteration_bounds = array<i64: 1, 1, 1>, scalar_prefetch = 0 : i64, scratch_operands = 1 : i64, tpu.core_type = #tpu.core_type<tc>, window_params = [{transform_indices = @transform_0, window_bounds = array<i64: 32, 192>}, {transform_indices = @transform_1, window_bounds = array<i64: 192, 32>}, {transform_indices = @transform_2, window_bounds = array<i64: 1, 32>}, {transform_indices = @transform_3, window_bounds = array<i64: 32, 32>}]} {
    %c0_i32 = arith.constant 0 : i32
    %0 = arith.cmpi eq, %arg2, %c0_i32 : i32
    %1 = arith.extui %0 : i1 to i32
    %c0_i32_0 = arith.constant 0 : i32
    %2 = arith.cmpi ne, %1, %c0_i32_0 : i32
    scf.if %2 {
      %cst_10 = arith.constant 0.000000e+00 : f32
      %12 = vector.broadcast %cst_10 : f32 to vector<32x32xf32>
      %c0_11 = arith.constant 0 : index
      %c0_12 = arith.constant 0 : index
      %13 = vector.load %arg7[%c0_11, %c0_12] : memref<32x32xf32, #tpu.memory_space<vmem>>, vector<32x32xf32>
      tpu.vector_store %arg7[%c0_11, %c0_12], %12 {strides = array<i32>} : memref<32x32xf32, #tpu.memory_space<vmem>>, vector<32x32xf32>,
    } else {
    }
    %c0 = arith.constant 0 : index
    %c0_1 = arith.constant 0 : index
    %3 = vector.load %arg7[%c0, %c0_1] : memref<32x32xf32, #tpu.memory_space<vmem>>, vector<32x32xf32>
    %c0_2 = arith.constant 0 : index
    %c0_3 = arith.constant 0 : index
    %4 = vector.load %arg3[%c0_2, %c0_3] : memref<32x192xbf16, #tpu.memory_space<vmem>>, vector<32x192xbf16>
    %c0_4 = arith.constant 0 : index
    %c0_5 = arith.constant 0 : index
    %5 = vector.load %arg4[%c0_4, %c0_5] : memref<192x32xbf16, #tpu.memory_space<vmem>>, vector<192x32xbf16>
    %cst = arith.constant dense<0.000000e+00> : vector<32x32xf32>
    %6 = tpu.matmul %4, %5, %cst {dimension_numbers = #tpu.dot_dimension_numbers<[1], [0], [0], [1], [0, 0, 1, 1], [], []>} : vector<32x192xbf16>, vector<192x32xbf16>, vector<32x32xf32> -> vector<32x32xf32>
    %7 = arith.addf %3, %6 : vector<32x32xf32>
    %c0_6 = arith.constant 0 : index
    %c0_7 = arith.constant 0 : index
    %8 = vector.load %arg7[%c0_6, %c0_7] : memref<32x32xf32, #tpu.memory_space<vmem>>, vector<32x32xf32>
    tpu.vector_store %arg7[%c0_6, %c0_7], %7 {strides = array<i32>} : memref<32x32xf32, #tpu.memory_space<vmem>>, vector<32x32xf32>,
    %c0_i32_8 = arith.constant 0 : i32
    %9 = arith.cmpi eq, %arg2, %c0_i32_8 : i32
    %10 = arith.extui %9 : i1 to i32
    %c0_i32_9 = arith.constant 0 : i32
    %11 = arith.cmpi ne, %10, %c0_i32_9 : i32
    scf.if %11 {
      %c0_10 = arith.constant 0 : index
      %c0_11 = arith.constant 0 : index
      %12 = vector.load %arg7[%c0_10, %c0_11] : memref<32x32xf32, #tpu.memory_space<vmem>>, vector<32x32xf32>
      %c0_12 = arith.constant 0 : index
      %c0_13 = arith.constant 0 : index
      %13 = vector.load %arg5[%c0_12, %c0_13] : memref<1x32xf32, #tpu.memory_space<vmem>>, vector<1x32xf32>
      %14 = vector.broadcast %13 : vector<1x32xf32> to vector<32x32xf32>
      %15 = arith.addf %12, %14 : vector<32x32xf32>
      %16 = arith.truncf %15 : vector<32x32xf32> to vector<32x32xbf16>
      %c0_14 = arith.constant 0 : index
      %c0_15 = arith.constant 0 : index
      %17 = vector.load %arg6[%c0_14, %c0_15] : memref<32x32xbf16, #tpu.memory_space<vmem>>, vector<32x32xbf16>
      tpu.vector_store %arg6[%c0_14, %c0_15], %16 {strides = array<i32>} : memref<32x32xbf16, #tpu.memory_space<vmem>>, vector<32x32xbf16>,
    } else {
    }
    return
  }
  func.func @transform_0(%arg0: i32, %arg1: i32, %arg2: i32) -> (i32, i32) {
    %c0_i32 = arith.constant 0 : i32
    return %arg0, %arg2 : i32, i32
  }
  func.func @transform_1(%arg0: i32, %arg1: i32, %arg2: i32) -> (i32, i32) {
    %c0_i32 = arith.constant 0 : i32
    return %arg2, %arg1 : i32, i32
  }
  func.func @transform_2(%arg0: i32, %arg1: i32, %arg2: i32) -> (i32, i32) {
    %c0_i32 = arith.constant 0 : i32
    %c0_i32_0 = arith.constant 0 : i32
    return %c0_i32, %arg1 : i32, i32
  }
  func.func @transform_3(%arg0: i32, %arg1: i32, %arg2: i32) -> (i32, i32) {
    %c0_i32 = arith.constant 0 : i32
    return %arg0, %arg1 : i32, i32
  }
}

</mosaic_0001>

<bundles_post_ra>
// kernel: tpu_custom_call.1
= control target key start
LH: loop header
LB: loop body
LE: loop exit
PB: predicated region body
PF: predicated region fallthrough
CT: control target
= control target key end

     0   :  { %s468_s0 = inlined_call_operand.vmem [shape: bf16[32,192], index: 0, kind: input, shape index: {}]   ;;  %s469_s1 = inlined_call_operand.vmem [shape: bf16[192,32], index: 1, kind: input, shape index: {}]   ;;  %s470_s2 = inlined_call_operand.vmem [shape: f32[1,32], index: 2, kind: input, shape index: {}]   ;;  %s471_s3 = inlined_call_operand.hbm [shape: bf16[32,32], index: 3, kind: output, shape index: {}]  }
   0x1   :  { %v320_v0 = vld [vmem:[%s469_s1 + $0x38] sm:$0xff]  ;;  %v319_v2 = vld [vmem:[%s469_s1 + $0x30] sm:$0xff]  ;;  %v318_v4 = vld [vmem:[%s469_s1 + $0x28] sm:$0xff] }
   0x2   :  { %v324_v1 = vld [vmem:[%s469_s1 + $0x58] sm:$0xff]  ;;  %154 = vmatpush.bf16.msra.mxu0 %v320_v0  ;;  %325 = vmatpush.bf16.msra.mxu2 %v320_v0  ;;  %v323_v3 = vld [vmem:[%s469_s1 + $0x50] sm:$0xff] }
   0x3   :  { %177 = vmatpush.bf16.msra.mxu1 %v324_v1 }
   0x6   :  { %155 = vmatpush.bf16.msra.mxu0 %v319_v2  ;;  %326 = vmatpush.bf16.msra.mxu2 %v319_v2 }
   0x7   :  { %8 = vsyncpa [#allocation4], 0  ;;  %178 = vmatpush.bf16.msra.mxu1 %v323_v3  ;;  %v322_v5 = vld [vmem:[%s469_s1 + $0x48] sm:$0xff]  ;;  %v317_v6 = vld [vmem:[%s469_s1 + $0x20] sm:$0xff]  ;;  %vm147_vm0 = vcmask 523264   ;;  %vm20_vm1 = vcmask 261120  }
   0x8   :  { %v321_v7 = vld [vmem:[%s469_s1 + $0x40] sm:$0xff]  ;;  %v247_v9 = vld [vmem:[%s468_s0 + $0x8] sm:$0xf0]  ;;  %v316_v11 = vld [vmem:[%s469_s1 + $0x18] sm:$0xff]  ;;  %v364_v24 = vmov 0.0   ;;  %vm220_vm2 = vcmask 257024  }
   0x9   :  { %v309_v8 = vld [vmem:[%s468_s0 + $0x4] sm:$0xf]  ;;  %v315_v12 = vld [vmem:[%s469_s1 + $0x10] sm:$0xff]  ;;  %v314_v13 = vld [vmem:[%s469_s1 + $0x8] sm:$0xff]  ;;  %21 = vst.msk [vmem:[#allocation2] sm:$0xff] %vm20_vm1, %v364_v24  ;;  %s231_s28 = sshll.u32 %s471_s3, 4  ;;  %s232_s28 = int_to_ptr.hbm [resolvable:$true] %s231_s28 }
   0xa   :  { %156 = vmatpush.bf16.msra.mxu0 %v318_v4  ;;  %327 = vmatpush.bf16.msra.mxu2 %v318_v4  ;;  %v250_v10 = vor.u32 %v309_v8, %v247_v9  ;;  %v313_v14 = vld [vmem:[%s469_s1] sm:$0xff]  ;;  %v310_v16 = vld [vmem:[%s468_s0 + $0x4] sm:$0xf0]  ;;  %v253_v17 = vld [vmem:[%s468_s0 + $0x10] sm:$0xf]  ;;  %22 = vst.msk [vmem:[#allocation2 + $0x8] sm:$0xff] %vm20_vm1, %v364_v24 }
   0xb   :  { %179 = vmatpush.bf16.msra.mxu1 %v322_v5  ;;  %v245_v15 = vld [vmem:[%s468_s0] sm:$0xf]  ;;  %v312_v18 = vld [vmem:[%s468_s0 + $0x14] sm:$0xf0]  ;;  %v311_v19 = vld [vmem:[%s468_s0 + $0x14] sm:$0xf] }
   0xc   :  { %v255_v20 = vld [vmem:[%s468_s0 + $0x18] sm:$0xf0]  ;;  %v246_v21 = vor.u32 %v310_v16, %v245_v15  ;;  %v254_v22 = vor.u32 %v312_v18, %v253_v17  ;;  %23 = vst.msk [vmem:[#allocation2 + $0x10] sm:$0xff] %vm20_vm1, %v364_v24  ;;  %v337_v38 = vld [vmem:[%s470_s2] ss:$0 sm:$0xff]  ;;  %s365_s2 = smov [#allocation3]  }
   0xd   :  { %v258_v23 = vor.u32 %v311_v19, %v255_v20  ;;  %24 = vst.msk [vmem:[#allocation2 + $0x18] sm:$0xff] %vm20_vm1, %v364_v24  ;;  %s229_s25 = sshll.u32 %s365_s2, 4  ;;  %s366_s29 = smov 64   ;;  %s230_s25 = int_to_ptr.vmem [resolvable:$true] %s229_s25 }
   0xe   :  { %157 = vmatpush.bf16.msra.mxu0 %v317_v6  ;;  %328 = vmatpush.bf16.msra.mxu2 %v317_v6  ;;  %s367_s30 = smov 4  }
   0xf   :  { %180 = vmatpush.bf16.msra.mxu1 %v321_v7 }
  0x10   :  { %v25_v27 = vld [vmem:[#allocation2] sm:$0xff] }
  0x11   :  { %v26_v35 = vld [vmem:[#allocation2 + $0x8] sm:$0xff] }
  0x12   :  { %307 = vmatmul.msk.bf16.vlgmr.msra.gmra.mxu1 %vm147_vm0, %v250_v10  ;;  %158 = vmatpush.bf16.msra.mxu0 %v316_v11 }
  0x13   :  { %329 = vmatpush.bf16.msra.mxu2 %v316_v11  ;;  %v27_v32 = vld [vmem:[#allocation2 + $0x10] sm:$0xff] }
  0x14   :  { %v28_v44 = vld [vmem:[#allocation2 + $0x18] sm:$0xff] }
  0x16   :  { %159 = vmatpush.bf16.msra.mxu0 %v315_v12 }
  0x17   :  { %330 = vmatpush.bf16.msra.mxu2 %v315_v12 }
  0x1a   :  { %160 = vmatpush.bf16.msra.mxu0 %v314_v13 }
  0x1b   :  { %331 = vmatpush.bf16.msra.mxu2 %v314_v13 }
  0x1e   :  { %161 = vmatpush.bf16.msra.mxu0 %v313_v14 }
  0x1f   :  { %332 = vmatpush.bf16.msra.mxu2 %v313_v14 }
  0x21   :  { %162 = vmatmul.bf16.vlgmr.msra.gmra.mxu0 %v246_v21 }
  0x22   :  { %167 = vmatmul.bf16.vlgmr.msra.gmra.mxu2 %v254_v22  ;;  %308 = vmatmul.msk.bf16.gmra.mxu1 %vm147_vm0, %v258_v23 }
  0x8f   :  { %v182_v25 = vpop.f32.mrf.mxu1 }
  0x97   :  { %v184_v26 = vpop.f32.mrf.mxu1 }
  0x9e   :  { %v163_v28 = vpop.f32.mrf.mxu0 }
  0x9f   :  { %v183_v29 = vadd.f32 %v182_v25, %v163_v28  ;;  %v187_v31 = vpop.f32.mrf.mxu1 }
  0xa1   :  { %v192_v30 = vadd.f32 %v183_v29, %v25_v27 }
  0xa3   :  { %197 = vst.msk [vmem:[#allocation2] sm:$0xff] %vm20_vm1, %v192_v30 }
  0xa5   :  { %v168_v33 = vpop.f32.mrf.mxu2 }
  0xa6   :  { %v188_v34 = vadd.f32 %v187_v31, %v168_v33  ;;  %v165_v36 = vpop.f32.mrf.mxu0 }
  0xa7   :  { %v185_v37 = vadd.f32 %v184_v26, %v165_v36  ;;  %v189_v43 = vpop.f32.mrf.mxu1 }
  0xa8   :  { %v194_v39 = vadd.f32 %v188_v34, %v27_v32 }
  0xa9   :  { %v193_v40 = vadd.f32 %v185_v37, %v26_v35 }
  0xaa   :  { %199 = vst.msk [vmem:[#allocation2 + $0x10] sm:$0xff] %vm20_vm1, %v194_v39  ;;  %v204_v41 = vld [vmem:[#allocation2] sm:$0xff] }
  0xab   :  { %198 = vst.msk [vmem:[#allocation2 + $0x8] sm:$0xff] %vm20_vm1, %v193_v40  ;;  %v212_v42 = vadd.f32 %v337_v38, %v204_v41 }
  0xad   :  { %v170_v45 = vpop.f32.mrf.mxu2  ;;  %v216_v46 = vpack.c.bf16 %v212_v42, %v212_v42 }
  0xae   :  { %v190_v47 = vadd.f32 %v189_v43, %v170_v45 }
  0xaf   :  { %221 = vst.msk [vmem:[#allocation3] sm:$0xf] %vm220_vm2, %v216_v46 }
  0xb0   :  { %v195_v48 = vadd.f32 %v190_v47, %v28_v44 }
  0xb1   :  { %v206_v49 = vld [vmem:[#allocation2 + $0x10] sm:$0xff] }
  0xb2   :  { %200 = vst.msk [vmem:[#allocation2 + $0x18] sm:$0xff] %vm20_vm1, %v195_v48  ;;  %v205_v50 = vld [vmem:[#allocation2 + $0x8] sm:$0xff]  ;;  %v214_v51 = vadd.f32 %v337_v38, %v206_v49 }
  0xb3   :  { %v213_v52 = vadd.f32 %v337_v38, %v205_v50 }
  0xb4   :  { %v218_v53 = vpack.c.bf16 %v214_v51, %v214_v51 }
  0xb5   :  { %v217_v54 = vpack.c.bf16 %v213_v52, %v213_v52 }
  0xb6   :  { %223 = vst.msk [vmem:[#allocation3 + $0x8] sm:$0xf] %vm220_vm2, %v218_v53 }
  0xb7   :  { %222 = vst.msk [vmem:[#allocation3 + $0x4] sm:$0xf] %vm220_vm2, %v217_v54 }
  0xb9   :  { %v207_v55 = vld [vmem:[#allocation2 + $0x18] sm:$0xff] }
  0xba   :  { %v215_v56 = vadd.f32 %v337_v38, %v207_v55 }
  0xbc   :  { %v219_v57 = vpack.c.bf16 %v215_v56, %v215_v56 }
  0xbe   :  { %224 = vst.msk [vmem:[#allocation3 + $0xc] sm:$0xf] %vm220_vm2, %v219_v57 }
  0xbf   :  { %237 = dma.vmem_to_hbm [thread:$0]  %s230_s25, 256, %s232_s28, [#allocation4], %s366_s29, %s366_s29, %s367_s30  }
  0xc0   :  { %362 = dma.done.wait [#allocation4], 256  }
  0xc1   :  { %363 = vsyncadd [#allocation4], 4294967040 }
  0xc2   :  { %242 = vsyncpa [#allocation4], 1 }

</bundles_post_ra>
